<compile_context>
chip_gen: v6e
topology: v6e:2x2x1
jax: 0.10.0
libtpu: 0.0.40
codegen_flags: <defaults>
</compile_context>

<pallas_src>
import jax
import jax.numpy as jnp
from jax.experimental import pallas as pl
from jax.experimental.pallas import tpu as pltpu

BN_EPS = 1e-5


def _round_up(x, m):
    return (x + m - 1) // m * m


def mlp_onehot_kernel(x_ref, w_ref, p_ref, o_ref):
    # Linear: (tm, F) @ (F, tn) -> (tm, tn), f32 accumulation on the MXU.
    y = jnp.dot(x_ref[...], w_ref[...], preferred_element_type=jnp.float32)
    bias = p_ref[0:1, :]
    scale = p_ref[1:2, :]
    shift = p_ref[2:3, :]
    # bias + ReLU
    y = jnp.maximum(y + bias, 0.0)
    # Dropout: identity at inference.
    # TODO(synk): training-mode dropout (torch RNG) has no deterministic Pallas equivalent.
    # Folded eval-mode BatchNorm1d: y * (gamma * rsqrt(var+eps)) + (beta - mean * scale)
    o_ref[...] = (y * scale + shift).astype(o_ref.dtype)


def mlp_onehot_forward(x, w, b, gamma, beta, running_mean, running_var,
                       *, tm=None, tn=None, param_dtype=None, out_dtype=None):
    """x: (N, F), w: (F, O) (pre-transposed Linear weight), others: (1, O) or (O,)."""
    N, F = x.shape
    Fw, O = w.shape
    assert Fw == F
    out_dtype = x.dtype if out_dtype is None else out_dtype
    f32 = jnp.float32

    # ---- Fold bias / eval-mode BN into a packed (8, O) param slab (wrapper-side).
    scale = (gamma.reshape(1, O).astype(f32)
             * jax.lax.rsqrt(running_var.reshape(1, O).astype(f32) + BN_EPS))
    shift = (beta.reshape(1, O).astype(f32)
             - running_mean.reshape(1, O).astype(f32) * scale)
    params = jnp.concatenate(
        [b.reshape(1, O).astype(f32), scale, shift, jnp.zeros((5, O), f32)], axis=0)

    # ---- Optional low-precision compute path (halves x/W HBM traffic; bf16 MXU).
    if param_dtype is not None:
        x = x.astype(param_dtype)
        w = w.astype(param_dtype)
    in_isz = jnp.dtype(x.dtype).itemsize
    out_isz = jnp.dtype(out_dtype).itemsize

    # ---- Generation-aware VMEM budget (v7x has only 64 MiB physical per TC).
    try:
        vmem_cap = int(getattr(pltpu.get_tpu_info(), "vmem_capacity_bytes",
                               64 * 2 ** 20))
    except Exception:
        vmem_cap = 64 * 2 ** 20
    budget = (vmem_cap * 3) // 4          # ~75% of physical VMEM

    # ---- Column tile: keep full O resident only if the double-buffered weight slab
    #      fits ~1/3 of the budget; otherwise lane-dense multiples of 128 (ragged
    #      last column block handled by Pallas -- no O padding / slicing needed).
    def wslab_bytes(tn_):
        return 2 * _round_up(F, 8) * _round_up(tn_, 128) * in_isz

    if tn is None:
        if wslab_bytes(O) <= budget // 3:
            tn = O
        else:
            tn = 128
            for cand in (1024, 512, 256):
                if wslab_bytes(cand) <= budget // 3:
                    tn = cand
                    break
    if tn > O:
        tn = O
    n_j = pl.cdiv(O, tn)

    # ---- Row tile.  No batch padding:
    #      * small N  -> one full-extent row block (block dim == array dim is legal),
    #      * medium N -> two tiles (keeps both v7x TensorCores busy),
    #      * large N  -> 1024-row tiles, ragged last block masked by Pallas.
    if tm is None:
        if N <= 512:
            tm = N
        elif N <= 2048:
            tm = _round_up(pl.cdiv(N, 2), 8)
        else:
            tm = 1024
    else:
        tm = max(8, _round_up(tm, 8))
    if tm >= N:
        tm = N

    # ---- VMEM estimate; shrink the row tile if it would not fit the budget.
    def est_bytes(tm_, tn_):
        rows = _round_up(tm_, 8)
        lanes = _round_up(tn_, 128)
        return (2 * rows * _round_up(F, 128) * in_isz      # x tile (double-buffered)
                + 2 * rows * lanes * out_isz               # output tile
                + 2 * _round_up(F, 8) * lanes * in_isz     # weight slab
                + 2 * 8 * lanes * 4)                       # bias/scale/shift slab

    est = est_bytes(tm, tn)
    while est > budget and tm > 256:
        tm = max(256, _round_up(tm // 2, 8))
        est = est_bytes(tm, tn)
    vmem_limit = int(min(budget, max(32 * 2 ** 20, 2 * est)))

    n_i = pl.cdiv(N, tm)

    # ---- Grid axis order: re-stream whichever operand costs less to re-fetch.
    #      (i outer, j inner): W re-streamed n_i times, x streamed once.
    if n_i == 1 or n_j == 1:
        row_outer = True
    else:
        row_outer = (n_i * F * O) <= (n_j * N * F)

    if row_outer:
        grid = (n_i, n_j)
        x_map = lambda i, j: (i, 0)
        wp_map = lambda i, j: (0, j)
        o_map = lambda i, j: (i, j)
    else:
        grid = (n_j, n_i)
        x_map = lambda j, i: (i, 0)
        wp_map = lambda j, i: (0, j)
        o_map = lambda j, i: (i, j)

    out = pl.pallas_call(
        mlp_onehot_kernel,
        out_shape=jax.ShapeDtypeStruct((N, O), out_dtype),
        grid_spec=pltpu.PrefetchScalarGridSpec(
            num_scalar_prefetch=0,
            grid=grid,
            in_specs=[
                pl.BlockSpec((tm, F), x_map),    # x row tile
                pl.BlockSpec((F, tn), wp_map),   # weight column slab
                pl.BlockSpec((8, tn), wp_map),   # bias/scale/shift slab
            ],
            out_specs=pl.BlockSpec((tm, tn), o_map),
        ),
        compiler_params=pltpu.CompilerParams(
            dimension_semantics=("parallel", "parallel"),
            vmem_limit_bytes=vmem_limit),
    )(x, w, params)
    return out


def reference(x, w, b, gamma, beta, running_mean, running_var):
    y = x @ w + b.reshape(1, -1)
    y = jnp.maximum(y, 0.0)
    y = ((y - running_mean.reshape(1, -1))
         / jnp.sqrt(running_var.reshape(1, -1) + BN_EPS)
         * gamma.reshape(1, -1) + beta.reshape(1, -1))
    return y


if __name__ == "__main__":
    # Shapes consistent with the module: nfeat=32, output=128.
    nfeat, output = 32, 128

    key = jax.random.PRNGKey(0)
    ks = jax.random.split(key, 9)

    bound = 1.0 / (nfeat ** 0.5)  # PyTorch nn.Linear default init range
    w = jax.random.uniform(ks[0], (nfeat, output), jnp.float32, -bound, bound)
    b = jax.random.uniform(ks[1], (1, output), jnp.float32, -bound, bound)
    gamma = 1.0 + 0.1 * jax.random.normal(ks[2], (1, output), jnp.float32)
    beta = 0.1 * jax.random.normal(ks[3], (1, output), jnp.float32)
    running_mean = 0.1 * jax.random.normal(ks[4], (1, output), jnp.float32)
    running_var = 0.5 + jnp.abs(jax.random.normal(ks[5], (1, output), jnp.float32))

    # Cases: tiny single tile; non-multiple-of-8 batch as one full-extent block;
    # medium batch exercising the 2-tile ragged grid.
    cases = (("tiny", 16, ks[6]), ("full-extent-300", 300, ks[7]),
             ("two-tile-ragged-600", 600, ks[8]))
    for name, N, kx in cases:
        x = jax.random.normal(kx, (N, nfeat), dtype=jnp.float32)
        out = mlp_onehot_forward(x, w, b, gamma, beta, running_mean, running_var)
        out = jax.block_until_ready(out)
        ref = reference(x, w, b, gamma, beta, running_mean, running_var)
        assert out.shape == (N, output), f"bad shape ({name})"
        assert jnp.allclose(out, ref, atol=2e-5, rtol=2e-5), f"mismatch vs reference ({name})"

    print("KERNEL_OK")
</pallas_src>

<mosaic_0001>
module attributes {stable_mosaic.version = 11 : i64} {
  func.func @mlp_onehot_kernel(%arg0: i32, %arg1: i32, %arg2: memref<16x32xf32, #tpu.memory_space<vmem>>, %arg3: memref<32x128xf32, #tpu.memory_space<vmem>>, %arg4: memref<8x128xf32, #tpu.memory_space<vmem>>, %arg5: memref<16x128xf32, #tpu.memory_space<vmem>>) attributes {dimension_semantics = [#tpu.dimension_semantics<parallel>, #tpu.dimension_semantics<parallel>], iteration_bounds = array<i64: 1, 1>, scalar_prefetch = 0 : i64, scratch_operands = 0 : i64, tpu.core_type = #tpu.core_type<tc>, window_params = [{transform_indices = @transform_0, window_bounds = array<i64: 16, 32>}, {transform_indices = @transform_1, window_bounds = array<i64: 32, 128>}, {transform_indices = @transform_2, window_bounds = array<i64: 8, 128>}, {transform_indices = @transform_3, window_bounds = array<i64: 16, 128>}]} {
    %c0 = arith.constant 0 : index
    %c0_0 = arith.constant 0 : index
    %0 = vector.load %arg2[%c0, %c0_0] : memref<16x32xf32, #tpu.memory_space<vmem>>, vector<16x32xf32>
    %c0_1 = arith.constant 0 : index
    %c0_2 = arith.constant 0 : index
    %1 = vector.load %arg3[%c0_1, %c0_2] : memref<32x128xf32, #tpu.memory_space<vmem>>, vector<32x128xf32>
    %cst = arith.constant dense<0.000000e+00> : vector<16x128xf32>
    %2 = tpu.matmul %0, %1, %cst {dimension_numbers = #tpu.dot_dimension_numbers<[1], [0], [0], [1], [0, 0, 1, 1], [], []>} : vector<16x32xf32>, vector<32x128xf32>, vector<16x128xf32> -> vector<16x128xf32>
    %c0_3 = arith.constant 0 : index
    %c0_4 = arith.constant 0 : index
    %3 = vector.load %arg4[%c0_3, %c0_4] : memref<8x128xf32, #tpu.memory_space<vmem>>, vector<1x128xf32>
    %c1 = arith.constant 1 : index
    %c0_5 = arith.constant 0 : index
    %4 = vector.load %arg4[%c1, %c0_5] : memref<8x128xf32, #tpu.memory_space<vmem>>, vector<1x128xf32>
    %c2 = arith.constant 2 : index
    %c0_6 = arith.constant 0 : index
    %5 = vector.load %arg4[%c2, %c0_6] : memref<8x128xf32, #tpu.memory_space<vmem>>, vector<1x128xf32>
    %6 = vector.broadcast %3 : vector<1x128xf32> to vector<16x128xf32>
    %7 = arith.addf %2, %6 : vector<16x128xf32>
    %cst_7 = arith.constant 0.000000e+00 : f32
    %8 = vector.broadcast %cst_7 : f32 to vector<16x128xf32>
    %9 = arith.maximumf %7, %8 : vector<16x128xf32>
    %10 = vector.broadcast %4 : vector<1x128xf32> to vector<16x128xf32>
    %11 = arith.mulf %9, %10 : vector<16x128xf32>
    %12 = vector.broadcast %5 : vector<1x128xf32> to vector<16x128xf32>
    %13 = arith.addf %11, %12 : vector<16x128xf32>
    %c0_8 = arith.constant 0 : index
    %c0_9 = arith.constant 0 : index
    %14 = vector.load %arg5[%c0_8, %c0_9] : memref<16x128xf32, #tpu.memory_space<vmem>>, vector<16x128xf32>
    tpu.vector_store %arg5[%c0_8, %c0_9], %13 {strides = array<i32>} : memref<16x128xf32, #tpu.memory_space<vmem>>, vector<16x128xf32>,
    return
  }
  func.func @transform_0(%arg0: i32, %arg1: i32) -> (i32, i32) {
    %c0_i32 = arith.constant 0 : i32
    %c0_i32_0 = arith.constant 0 : i32
    return %arg0, %c0_i32 : i32, i32
  }
  func.func @transform_1(%arg0: i32, %arg1: i32) -> (i32, i32) {
    %c0_i32 = arith.constant 0 : i32
    %c0_i32_0 = arith.constant 0 : i32
    return %c0_i32, %arg1 : i32, i32
  }
  func.func @transform_2(%arg0: i32, %arg1: i32) -> (i32, i32) {
    %c0_i32 = arith.constant 0 : i32
    %c0_i32_0 = arith.constant 0 : i32
    return %c0_i32, %arg1 : i32, i32
  }
  func.func @transform_3(%arg0: i32, %arg1: i32) -> (i32, i32) {
    %c0_i32 = arith.constant 0 : i32
    return %arg0, %arg1 : i32, i32
  }
}

</mosaic_0001>

<bundles_post_ra>
// kernel: tpu_custom_call.1
= control target key start
LH: loop header
LB: loop body
LE: loop exit
PB: predicated region body
PF: predicated region fallthrough
CT: control target
= control target key end

     0   :  { %8 = vsyncpa [#allocation3], 0  ;;  %s346_s0 = inlined_call_operand.hbm [shape: f32[16,32], index: 0, kind: input, shape index: {}]   ;;  %s347_s1 = inlined_call_operand.hbm [shape: f32[32,128], index: 1, kind: input, shape index: {}]   ;;  %s348_s2 = inlined_call_operand.hbm [shape: f32[8,128], index: 2, kind: input, shape index: {}]   ;;  %s349_s3 = inlined_call_operand.hbm [shape: f32[16,128], index: 3, kind: output, shape index: {}]  }
   0x1   :  { %9 = vsyncpa [#allocation6], 0 }
   0x2   :  { %10 = vsyncpa [#allocation4], 0  ;;  %s297_s12 = smov [#allocation5]   ;;  %s298_s14 = smov [#allocation2]  }
   0x3   :  { %s28_s13 = sshll.u32 %s297_s12, 4  ;;  %s16_s15 = sshll.u32 %s298_s14, 4  ;;  %s29_s13 = int_to_ptr.vmem [resolvable:$true] %s28_s13  ;;  %s17_s15 = int_to_ptr.vmem [resolvable:$true] %s16_s15 }
   0x4   :  { %s219_s16 = scalar_lea.vmem %s29_s13, 512  ;;  %p224_p1 = scmp.lt.s32.totalorder %s29_s13, %s29_s13 }
   0x5   :  { %p220_p0 = scmp.ne.s32.totalorder %s29_s13, %s219_s16  ;;  %p225_p2 = scmp.lt.s32.totalorder %s219_s16, %s219_s16 }
   0x7   :  { %p226_p3 = por %p225_p2, %p224_p1 }
   0x9   :  { %p227_p4 = pnand %p226_p3, %p220_p0 }
   0xb   :  { %230 = shalt.err (!%p227_p4)
}
   0xc   :  { %s299_s17 = smov 128   ;;  %s300_s18 = smov 8  }
   0xd   :  { %34 = dma.hbm_to_vmem [thread:$0]  %s347_s1, 512, %s29_s13, [#allocation6], %s299_s17, %s299_s17, %s300_s18  }
   0xe   :  { %s239_s21 = scalar_lea.vmem %s17_s15, 256  ;;  %p244_p6 = scmp.lt.s32.totalorder %s17_s15, %s17_s15 }
   0xf   :  { %p240_p5 = scmp.ne.s32.totalorder %s17_s15, %s239_s21  ;;  %p245_p7 = scmp.lt.s32.totalorder %s239_s21, %s239_s21 }
  0x11   :  { %p246_p8 = por %p245_p7, %p244_p6 }
  0x13   :  { %p247_p9 = pnand %p246_p8, %p240_p5 }
  0x15   :  { %250 = shalt.err (!%p247_p9)
}
  0x16   :  { %22 = dma.hbm_to_vmem [thread:$0]  %s346_s0, 256, %s17_s15, [#allocation3], %s299_s17, %s299_s17, %s300_s18  }
  0x17   :  { %s301_s24 = smov [#allocation7]  }
  0x18   :  { %s41_s25 = sshll.u32 %s301_s24, 4  ;;  %s42_s25 = int_to_ptr.vmem [resolvable:$true] %s41_s25 }
  0x19   :  { %s259_s26 = scalar_lea.vmem %s42_s25, 128  ;;  %p264_p11 = scmp.lt.s32.totalorder %s42_s25, %s42_s25 }
  0x1a   :  { %p260_p10 = scmp.ne.s32.totalorder %s42_s25, %s259_s26  ;;  %p265_p12 = scmp.lt.s32.totalorder %s259_s26, %s259_s26 }
  0x1c   :  { %p266_p13 = por %p265_p12, %p264_p11 }
  0x1e   :  { %p267_p0 = pnand %p266_p13, %p260_p10 }
  0x20   :  { %270 = shalt.err (!%p267_p0)
}
  0x21   :  { %44 = dma.hbm_to_vmem [thread:$0]  %s348_s2, 128, %s42_s25, [#allocation6]  }
  0x22   :  { %291 = dma.done.wait [#allocation3], 256  }
  0x23   :  { %292 = vsyncadd [#allocation3], 4294967040 }
  0x24   :  { %293 = dma.done.wait [#allocation6], 640  }
  0x25   :  { %294 = vsyncadd [#allocation6], 4294966656  ;;  %vm67_vm0 = vcmask 261120   ;;  %v59_v0 = vld [vmem:[#allocation5 + $0x18] sm:$0xff]  ;;  %v58_v1 = vld [vmem:[#allocation5 + $0x10] sm:$0xff]  ;;  %s302_s0 = smov [#allocation8]  }
  0x26   :  { %194 = vmatprep.subr.mxu0 %v59_v0  ;;  %v54_v2 = vld [vmem:[#allocation2] sm:$0xff]  ;;  %v57_v3 = vld [vmem:[#allocation5 + $0x8] sm:$0xff]  ;;  %v56_v4 = vld [vmem:[#allocation5] sm:$0xff]  ;;  %s170_s2 = sshll.u32 %s302_s0, 4  ;;  %s171_s2 = int_to_ptr.vmem [resolvable:$true] %s170_s2 }
  0x27   :  { %195 = vmatpush3.msra.mxu0 %v59_v0  ;;  %202 = vmatprep.mubr.msk.f32.mxu0 %vm67_vm0, %v54_v2  ;;  %v55_v5 = vld [vmem:[#allocation2 + $0x8] sm:$0xff]  ;;  %v183_v6 = vld [vmem:[#allocation7] ss:$0 sm:$0xff]  ;;  %v186_v9 = vld [vmem:[#allocation7 + $0x1] ss:$0 sm:$0xff]  ;;  %s271_s28 = scalar_lea.vmem %s171_s2, 256  ;;  %p276_p2 = scmp.lt.s32.totalorder %s171_s2, %s171_s2 }
  0x28   :  { %196 = vmatprep.subr.mxu0 %v58_v1  ;;  %v187_v13 = vld [vmem:[#allocation7 + $0x2] ss:$0 sm:$0xff]  ;;  %p272_p1 = scmp.ne.s32.totalorder %s171_s2, %s271_s28  ;;  %p277_p3 = scmp.lt.s32.totalorder %s271_s28, %s271_s28 }
  0x29   :  { %197 = vmatpush3.msra.mxu0 %v58_v1 }
  0x2a   :  { %198 = vmatprep.subr.mxu0 %v57_v3  ;;  %p278_p4 = por %p277_p3, %p276_p2 }
  0x2b   :  { %199 = vmatpush3.msra.mxu0 %v57_v3 }
  0x2c   :  { %200 = vmatprep.subr.mxu0 %v56_v4  ;;  %p279_p5 = pnand %p278_p4, %p272_p1 }
  0x2d   :  { %201 = vmatpush3.msra.mxu0 %v56_v4 }
  0x2e   :  { %203 = vmatmul.mubr.msk.f32.vlgmr.msra.gmra.mxu0 %vm67_vm0, %v55_v5 }
  0xee   :  { %v204_v7 = vpop.f32.mrf.mxu0 }
  0xef   :  { %v146_v8 = vadd.f32 %v204_v7, %v183_v6 }
  0xf0   :  { %v140_v10 = vpop.f32.mrf.mxu0 }
  0xf1   :  { %v150_v11 = vmax.f32 %v146_v8, 0.0  ;;  %v141_v12 = vadd.f32 %v183_v6, %v140_v10 }
  0xf3   :  { %v156_v14 = vmul.f32 %v186_v9, %v150_v11  ;;  %v149_v15 = vmax.f32 %v141_v12, 0.0 }
  0xf5   :  { %v162_v16 = vadd.f32 %v187_v13, %v156_v14  ;;  %v155_v17 = vmul.f32 %v186_v9, %v149_v15 }
  0xf7   :  { %164 = vst [vmem:[#allocation8 + $0x8] sm:$0xff] %v162_v16  ;;  %v161_v18 = vadd.f32 %v187_v13, %v155_v17 }
  0xf9   :  { %163 = vst [vmem:[#allocation8] sm:$0xff] %v161_v18 }
  0xfa   :  { %282 = shalt.err (!%p279_p5)
}
  0xfb   :  { %176 = dma.vmem_to_hbm [thread:$0]  %s171_s2, 256, %s349_s3, [#allocation4], %s299_s17, %s299_s17, %s300_s18  }
  0xfc   :  { %295 = dma.done.wait [#allocation4], 256  }
  0xfd   :  { %296 = vsyncadd [#allocation4], 4294967040 }
  0xfe   :  { %180 = vsyncpa [#allocation3], 1 }
  0xff   :  { %181 = vsyncpa [#allocation6], 1 }
 0x100   :  { %182 = vsyncpa [#allocation4], 1 }

</bundles_post_ra>
